<compile_context>
chip_gen: v7x
topology: tpu7x:2x2x1
jax: 0.10.0
libtpu: 0.0.40
codegen_flags: <defaults>
</compile_context>

<pallas_src>
import functools
import math

import jax
import jax.numpy as jnp
from jax.experimental import pallas as pl
from jax.experimental.pallas import tpu as pltpu


def _tpu_generation():
    """Best-effort TPU generation tag: 'v5' | 'v6' | 'v7' | 'unknown'."""
    try:
        kind = jax.devices()[0].device_kind.lower()
    except Exception:
        return "unknown"
    for tag in ("v7", "v6", "v5"):
        if tag in kind:
            return tag
    return "unknown"


def _vmem_bytes_estimate(block_b, S, I, hidden, H, D, x_itemsize, out_itemsize):
    """Rough per-grid-step VMEM footprint of the kernel."""
    rows = block_b * S
    x_tile = 2 * block_b * S * I * x_itemsize            # double-buffered input
    o_tile = 2 * block_b * H * S * D * out_itemsize      # double-buffered output
    w_tile = 2 * I * 3 * hidden * 2                      # bf16 fused weight
    b_tile = 2 * 3 * hidden * 4                          # f32 fused bias
    qkv = rows * 3 * hidden * (4 + 2)                    # f32 accum + bf16 casts
    scores = block_b * S * S * 4 * 3                     # scores/exp/probs (1 head)
    ctx = block_b * S * D * 4                            # one head's f32 context
    return x_tile + o_tile + w_tile + b_tile + qkv + scores + ctx


def _pick_block_b(B, S, I, hidden, H, D, x_itemsize, out_itemsize, gen):
    """Generation-aware number of batch elements per grid step."""
    # v5e's MXU (4x128^2) fills at 128 rows; v6e/v7x (2x256^2) want 256+ rows
    # and bigger tiles amortize the ~0.35us per-grid-step overhead.
    row_target = 128 if gen == "v5" else 256
    block_b = max(1, min(B, pl.cdiv(row_target, S)))
    # v7x: two TensorCores per chip -> keep >= 2 grid steps when the batch
    # allows so dimension_semantics=("parallel",) can feed both cores.
    if gen == "v7" and B >= 2:
        block_b = min(block_b, pl.cdiv(B, 2))
    # Per-generation VMEM budget (v7x has only 64 MiB per TensorCore).
    budget = (40 << 20) if gen == "v7" else (96 << 20)
    while block_b > 1 and _vmem_bytes_estimate(
            block_b, S, I, hidden, H, D, x_itemsize, out_itemsize) > budget:
        block_b -= 1
    return block_b, budget


def _fea_fusion_kernel(x_ref, wqkv_ref, bqkv_ref, o_ref, *,
                       seq_len, num_heads, head_size, block_b, compute_dtype):
    S, H, D = seq_len, num_heads, head_size
    hidden = H * D
    rows = block_b * S
    in_features = x_ref.shape[-1]

    # (block_b, S, I) -> (block_b*S, I): merge of leading dims (layout-trivial),
    # cast to the explicit MXU compute dtype (bf16) -- no f32 MXU path.
    x2d = x_ref[...].reshape(rows, in_features).astype(compute_dtype)

    # Single fused QKV projection (one MXU push instead of three), f32 accumulate.
    # The 1/sqrt(D) scale is already folded into the q columns by the wrapper.
    qkv = jnp.dot(x2d, wqkv_ref[...], preferred_element_type=jnp.float32)
    qkv = qkv + bqkv_ref[...]                              # (rows, 3*hidden), f32

    for h in range(H):          # static, unrolled; slices are free static views
        qh = qkv[:, h * D:(h + 1) * D]
        kh = qkv[:, hidden + h * D:hidden + (h + 1) * D]
        vh = qkv[:, 2 * hidden + h * D:2 * hidden + (h + 1) * D]
        qh = qh.astype(compute_dtype).reshape(block_b, S, D)
        kh = kh.astype(compute_dtype).reshape(block_b, S, D)
        vh = vh.astype(compute_dtype).reshape(block_b, S, D)

        # attention_scores = (Q/sqrt(D)) @ K^T -> (block_b, S, S), f32 accumulation.
        scores = jnp.einsum("bsd,btd->bst", qh, kh,
                            preferred_element_type=jnp.float32)

        # Max-stabilised softmax, f32 elementwise math (v5e-friendly).
        m = jnp.max(scores, axis=-1, keepdims=True)
        e = jnp.exp(scores - m)
        denom = jnp.sum(e, axis=-1, keepdims=True)
        probs = e * pl.reciprocal(denom, approx=True)
        # TODO(synk): training-mode Dropout(0.5) on probs omitted (eval semantics).

        # context_h = probs @ V -> (block_b, S, D), then straight into this head's
        # output column slice: bounds live f32 intermediates to a single head and
        # removes the final concatenate.
        ctx = jnp.einsum("bst,btd->bsd", probs.astype(compute_dtype), vh,
                         preferred_element_type=jnp.float32)
        o_ref[:, h * S * D:(h + 1) * S * D] = (
            ctx.reshape(block_b, S * D).astype(o_ref.dtype))


def fea_fusion_forward(x, wq, wk, wv, bq, bk, bv, *, num_heads,
                       block_b=None, compute_dtype=jnp.bfloat16):
    """x: (B, S, input_size); w*: (input_size, hidden); b*: (1, hidden)."""
    B, S, I = x.shape
    hidden = wq.shape[1]
    assert hidden % num_heads == 0
    H = num_heads
    D = hidden // H
    out_cols = H * S * D

    # One-time parameter transforms (free): fuse QKV, fold 1/sqrt(D) into the q
    # columns, cast the fused weight to the MXU compute dtype.  The fused bias
    # stays f32 and is added after the f32 accumulation inside the kernel.
    scale = 1.0 / math.sqrt(D)
    wqkv = jnp.concatenate([wq * scale, wk, wv], axis=1).astype(compute_dtype)
    bqkv = jnp.concatenate([bq * scale, bk, bv], axis=1).astype(jnp.float32)

    gen = _tpu_generation()
    if block_b is None:
        block_b, budget = _pick_block_b(B, S, I, hidden, H, D,
                                        x.dtype.itemsize, x.dtype.itemsize, gen)
    else:
        budget = (40 << 20) if gen == "v7" else (96 << 20)

    B_pad = pl.cdiv(B, block_b) * block_b
    if B_pad != B:
        x = jnp.pad(x, ((0, B_pad - B), (0, 0), (0, 0)))

    est = _vmem_bytes_estimate(block_b, S, I, hidden, H, D,
                               x.dtype.itemsize, x.dtype.itemsize)
    vmem_limit = int(min(budget, max(32 << 20, 2 * est)))

    kernel = functools.partial(_fea_fusion_kernel, seq_len=S, num_heads=H,
                               head_size=D, block_b=block_b,
                               compute_dtype=compute_dtype)

    out2d = pl.pallas_call(
        kernel,
        out_shape=jax.ShapeDtypeStruct((B_pad, out_cols), x.dtype),
        grid_spec=pltpu.PrefetchScalarGridSpec(
            num_scalar_prefetch=0,
            grid=(B_pad // block_b,),
            in_specs=[
                pl.BlockSpec((block_b, S, I), lambda b: (b, 0, 0)),   # x tile
                # TODO(synk): for large I / hidden, tile the weight over a K/N
                # grid axis with a pl.when-init accumulator (and single-buffer
                # it) instead of keeping the whole (I, 3*hidden) block resident.
                pl.BlockSpec((I, 3 * hidden), lambda b: (0, 0)),      # fused Wqkv
                pl.BlockSpec((1, 3 * hidden), lambda b: (0, 0)),      # fused bqkv
            ],
            out_specs=pl.BlockSpec((block_b, out_cols), lambda b: (b, 0)),
        ),
        compiler_params=pltpu.CompilerParams(
            dimension_semantics=("parallel",),
            vmem_limit_bytes=vmem_limit),
    )(x, wqkv, bqkv)

    # Lane-dense slab back to (B, H*S, D): contiguous reshape + slice (free).
    return out2d.reshape(B_pad, H * S, D)[:B]


def reference_forward(x, wq, wk, wv, bq, bk, bv, *, num_heads):
    """Pure-JAX f32 reference mirroring the PyTorch forward (eval mode)."""
    B, S, I = x.shape
    hidden = wq.shape[1]
    D = hidden // num_heads
    q = x @ wq + bq
    k = x @ wk + bk
    v = x @ wv + bv

    def heads(t):
        return t.reshape(B, S, num_heads, D).transpose(0, 2, 1, 3)

    qh, kh, vh = heads(q), heads(k), heads(v)
    scores = jnp.einsum("bhsd,bhtd->bhst", qh, kh) / math.sqrt(D)
    probs = jax.nn.softmax(scores, axis=-1)
    ctx = jnp.einsum("bhst,bhtd->bhsd", probs, vh)
    return ctx.reshape(B, num_heads * S, D)


if __name__ == "__main__":
    # Small shapes consistent with the module.
    B, S = 2, 8
    input_size = 32
    hidden_size = 32
    num_heads = 4

    key = jax.random.PRNGKey(0)
    kx, kq, kk, kv, kbq, kbk, kbv = jax.random.split(key, 7)

    x = jax.random.normal(kx, (B, S, input_size), dtype=jnp.float32)
    # Deterministic parameter init; weights stored as (input, hidden), i.e.
    # PyTorch's nn.Linear weight transposed.
    scale = 1.0 / math.sqrt(input_size)
    wq = jax.random.uniform(kq, (input_size, hidden_size), jnp.float32, -scale, scale)
    wk = jax.random.uniform(kk, (input_size, hidden_size), jnp.float32, -scale, scale)
    wv = jax.random.uniform(kv, (input_size, hidden_size), jnp.float32, -scale, scale)
    bq = jax.random.uniform(kbq, (1, hidden_size), jnp.float32, -scale, scale)
    bk = jax.random.uniform(kbk, (1, hidden_size), jnp.float32, -scale, scale)
    bv = jax.random.uniform(kbv, (1, hidden_size), jnp.float32, -scale, scale)

    out = fea_fusion_forward(x, wq, wk, wv, bq, bk, bv, num_heads=num_heads)
    out = jax.block_until_ready(out)

    ref = reference_forward(x, wq, wk, wv, bq, bk, bv, num_heads=num_heads)
    assert out.shape == (B, num_heads * S, hidden_size // num_heads), out.shape

    # Tolerance reflects the deliberate bf16 MXU operand path (f32 accumulation)
    # plus the approximate (EUP) softmax reciprocal; structure is checked via a
    # tight relative Frobenius error.
    max_err = float(jnp.max(jnp.abs(out - ref)))
    rel_err = float(jnp.linalg.norm(out - ref) / jnp.linalg.norm(ref))
    assert max_err < 5e-2 and rel_err < 2e-2, (max_err, rel_err)

    print("KERNEL_OK")
</pallas_src>

<mosaic_0001>
module attributes {stable_mosaic.version = 11 : i64} {
  func.func @_fea_fusion_kernel(%arg0: i32, %arg1: memref<2x8x32xf32, #tpu.memory_space<vmem>>, %arg2: memref<32x96xbf16, #tpu.memory_space<vmem>>, %arg3: memref<1x96xf32, #tpu.memory_space<vmem>>, %arg4: memref<2x256xf32, #tpu.memory_space<vmem>>) attributes {dimension_semantics = [#tpu.dimension_semantics<parallel>], iteration_bounds = array<i64: 1>, scalar_prefetch = 0 : i64, scratch_operands = 0 : i64, tpu.core_type = #tpu.core_type<tc>, window_params = [{transform_indices = @transform_0, window_bounds = array<i64: 2, 8, 32>}, {pipeline_mode = #tpu.pipeline_mode<synchronous>, transform_indices = @transform_1, window_bounds = array<i64: 32, 96>}, {pipeline_mode = #tpu.pipeline_mode<synchronous>, transform_indices = @transform_2, window_bounds = array<i64: 1, 96>}, {transform_indices = @transform_3, window_bounds = array<i64: 2, 256>}]} {
    %c0 = arith.constant 0 : index
    %c0_0 = arith.constant 0 : index
    %c0_1 = arith.constant 0 : index
    %0 = vector.load %arg1[%c0, %c0_0, %c0_1] : memref<2x8x32xf32, #tpu.memory_space<vmem>>, vector<2x8x32xf32>
    %1 = vector.shape_cast %0 : vector<2x8x32xf32> to vector<16x32xf32>
    %2 = arith.truncf %1 : vector<16x32xf32> to vector<16x32xbf16>
    %c0_2 = arith.constant 0 : index
    %c0_3 = arith.constant 0 : index
    %3 = vector.load %arg2[%c0_2, %c0_3] : memref<32x96xbf16, #tpu.memory_space<vmem>>, vector<32x96xbf16>
    %cst = arith.constant dense<0.000000e+00> : vector<16x96xf32>
    %4 = tpu.matmul %2, %3, %cst {dimension_numbers = #tpu.dot_dimension_numbers<[1], [0], [0], [1], [0, 0, 1, 1], [], []>} : vector<16x32xbf16>, vector<32x96xbf16>, vector<16x96xf32> -> vector<16x96xf32>
    %c0_4 = arith.constant 0 : index
    %c0_5 = arith.constant 0 : index
    %5 = vector.load %arg3[%c0_4, %c0_5] : memref<1x96xf32, #tpu.memory_space<vmem>>, vector<1x96xf32>
    %6 = vector.broadcast %5 : vector<1x96xf32> to vector<16x96xf32>
    %7 = arith.addf %4, %6 : vector<16x96xf32>
    %8 = vector.extract_strided_slice %7 {offsets = [0, 0], sizes = [16, 8], strides = [1, 1]} : vector<16x96xf32> to vector<16x8xf32>
    %9 = vector.extract_strided_slice %7 {offsets = [0, 32], sizes = [16, 8], strides = [1, 1]} : vector<16x96xf32> to vector<16x8xf32>
    %10 = vector.extract_strided_slice %7 {offsets = [0, 64], sizes = [16, 8], strides = [1, 1]} : vector<16x96xf32> to vector<16x8xf32>
    %11 = arith.truncf %8 : vector<16x8xf32> to vector<16x8xbf16>
    %12 = vector.shape_cast %11 : vector<16x8xbf16> to vector<2x8x8xbf16>
    %13 = arith.truncf %9 : vector<16x8xf32> to vector<16x8xbf16>
    %14 = vector.shape_cast %13 : vector<16x8xbf16> to vector<2x8x8xbf16>
    %15 = arith.truncf %10 : vector<16x8xf32> to vector<16x8xbf16>
    %16 = vector.shape_cast %15 : vector<16x8xbf16> to vector<2x8x8xbf16>
    "tpu.trace_start"() <{level = 10 : i32, message = "bsd,btd->bst"}> : () -> ()
    %cst_6 = arith.constant dense<0.000000e+00> : vector<2x8x8xf32>
    %17 = tpu.matmul %12, %14, %cst_6 {dimension_numbers = #tpu.dot_dimension_numbers<[2], [2], [1], [1], [0, 0, 0, 1, 1, 1], [0], [0]>} : vector<2x8x8xbf16>, vector<2x8x8xbf16>, vector<2x8x8xf32> -> vector<2x8x8xf32>
    "tpu.trace_stop"() : () -> ()
    %cst_7 = arith.constant dense<0xFF800000> : vector<2x8xf32>
    %18 = vector.multi_reduction <maximumf>, %17, %cst_7 [2] : vector<2x8x8xf32> to vector<2x8xf32>
    %19 = vector.shape_cast %18 : vector<2x8xf32> to vector<2x8x1xf32>
    %20 = vector.broadcast %19 : vector<2x8x1xf32> to vector<2x8x8xf32>
    %21 = arith.subf %17, %20 : vector<2x8x8xf32>
    %22 = math.exp %21 : vector<2x8x8xf32>
    %cst_8 = arith.constant dense<0.000000e+00> : vector<2x8xf32>
    %23 = vector.multi_reduction <add>, %22, %cst_8 [2] : vector<2x8x8xf32> to vector<2x8xf32>
    %24 = vector.shape_cast %23 : vector<2x8xf32> to vector<2x8x1xf32>
    %25 = tpu.reciprocal %24 {approx = true} : vector<2x8x1xf32> -> vector<2x8x1xf32>
    %26 = vector.broadcast %25 : vector<2x8x1xf32> to vector<2x8x8xf32>
    %27 = arith.mulf %22, %26 : vector<2x8x8xf32>
    %28 = arith.truncf %27 : vector<2x8x8xf32> to vector<2x8x8xbf16>
    "tpu.trace_start"() <{level = 10 : i32, message = "bst,btd->bsd"}> : () -> ()
    %cst_9 = arith.constant dense<0.000000e+00> : vector<2x8x8xf32>
    %29 = tpu.matmul %28, %16, %cst_9 {dimension_numbers = #tpu.dot_dimension_numbers<[2], [1], [1], [2], [0, 0, 0, 1, 1, 2], [0], [0]>} : vector<2x8x8xbf16>, vector<2x8x8xbf16>, vector<2x8x8xf32> -> vector<2x8x8xf32>
    "tpu.trace_stop"() : () -> ()
    %30 = vector.shape_cast %29 : vector<2x8x8xf32> to vector<2x64xf32>
    %c0_10 = arith.constant 0 : index
    %c0_11 = arith.constant 0 : index
    %31 = vector.load %arg4[%c0_10, %c0_11] : memref<2x256xf32, #tpu.memory_space<vmem>>, vector<2x64xf32>
    tpu.vector_store %arg4[%c0_10, %c0_11], %30 {strides = array<i32>} : memref<2x256xf32, #tpu.memory_space<vmem>>, vector<2x64xf32>,
    %32 = vector.extract_strided_slice %7 {offsets = [0, 8], sizes = [16, 8], strides = [1, 1]} : vector<16x96xf32> to vector<16x8xf32>
    %33 = vector.extract_strided_slice %7 {offsets = [0, 40], sizes = [16, 8], strides = [1, 1]} : vector<16x96xf32> to vector<16x8xf32>
    %34 = vector.extract_strided_slice %7 {offsets = [0, 72], sizes = [16, 8], strides = [1, 1]} : vector<16x96xf32> to vector<16x8xf32>
    %35 = arith.truncf %32 : vector<16x8xf32> to vector<16x8xbf16>
    %36 = vector.shape_cast %35 : vector<16x8xbf16> to vector<2x8x8xbf16>
    %37 = arith.truncf %33 : vector<16x8xf32> to vector<16x8xbf16>
    %38 = vector.shape_cast %37 : vector<16x8xbf16> to vector<2x8x8xbf16>
    %39 = arith.truncf %34 : vector<16x8xf32> to vector<16x8xbf16>
    %40 = vector.shape_cast %39 : vector<16x8xbf16> to vector<2x8x8xbf16>
    "tpu.trace_start"() <{level = 10 : i32, message = "bsd,btd->bst"}> : () -> ()
    %cst_12 = arith.constant dense<0.000000e+00> : vector<2x8x8xf32>
    %41 = tpu.matmul %36, %38, %cst_12 {dimension_numbers = #tpu.dot_dimension_numbers<[2], [2], [1], [1], [0, 0, 0, 1, 1, 1], [0], [0]>} : vector<2x8x8xbf16>, vector<2x8x8xbf16>, vector<2x8x8xf32> -> vector<2x8x8xf32>
    "tpu.trace_stop"() : () -> ()
    %cst_13 = arith.constant dense<0xFF800000> : vector<2x8xf32>
    %42 = vector.multi_reduction <maximumf>, %41, %cst_13 [2] : vector<2x8x8xf32> to vector<2x8xf32>
    %43 = vector.shape_cast %42 : vector<2x8xf32> to vector<2x8x1xf32>
    %44 = vector.broadcast %43 : vector<2x8x1xf32> to vector<2x8x8xf32>
    %45 = arith.subf %41, %44 : vector<2x8x8xf32>
    %46 = math.exp %45 : vector<2x8x8xf32>
    %cst_14 = arith.constant dense<0.000000e+00> : vector<2x8xf32>
    %47 = vector.multi_reduction <add>, %46, %cst_14 [2] : vector<2x8x8xf32> to vector<2x8xf32>
    %48 = vector.shape_cast %47 : vector<2x8xf32> to vector<2x8x1xf32>
    %49 = tpu.reciprocal %48 {approx = true} : vector<2x8x1xf32> -> vector<2x8x1xf32>
    %50 = vector.broadcast %49 : vector<2x8x1xf32> to vector<2x8x8xf32>
    %51 = arith.mulf %46, %50 : vector<2x8x8xf32>
    %52 = arith.truncf %51 : vector<2x8x8xf32> to vector<2x8x8xbf16>
    "tpu.trace_start"() <{level = 10 : i32, message = "bst,btd->bsd"}> : () -> ()
    %cst_15 = arith.constant dense<0.000000e+00> : vector<2x8x8xf32>
    %53 = tpu.matmul %52, %40, %cst_15 {dimension_numbers = #tpu.dot_dimension_numbers<[2], [1], [1], [2], [0, 0, 0, 1, 1, 2], [0], [0]>} : vector<2x8x8xbf16>, vector<2x8x8xbf16>, vector<2x8x8xf32> -> vector<2x8x8xf32>
    "tpu.trace_stop"() : () -> ()
    %54 = vector.shape_cast %53 : vector<2x8x8xf32> to vector<2x64xf32>
    %c0_16 = arith.constant 0 : index
    %c64 = arith.constant 64 : index
    %55 = vector.load %arg4[%c0_16, %c64] : memref<2x256xf32, #tpu.memory_space<vmem>>, vector<2x64xf32>
    tpu.vector_store %arg4[%c0_16, %c64], %54 {strides = array<i32>} : memref<2x256xf32, #tpu.memory_space<vmem>>, vector<2x64xf32>,
    %56 = vector.extract_strided_slice %7 {offsets = [0, 16], sizes = [16, 8], strides = [1, 1]} : vector<16x96xf32> to vector<16x8xf32>
    %57 = vector.extract_strided_slice %7 {offsets = [0, 48], sizes = [16, 8], strides = [1, 1]} : vector<16x96xf32> to vector<16x8xf32>
    %58 = vector.extract_strided_slice %7 {offsets = [0, 80], sizes = [16, 8], strides = [1, 1]} : vector<16x96xf32> to vector<16x8xf32>
    %59 = arith.truncf %56 : vector<16x8xf32> to vector<16x8xbf16>
    %60 = vector.shape_cast %59 : vector<16x8xbf16> to vector<2x8x8xbf16>
    %61 = arith.truncf %57 : vector<16x8xf32> to vector<16x8xbf16>
    %62 = vector.shape_cast %61 : vector<16x8xbf16> to vector<2x8x8xbf16>
    %63 = arith.truncf %58 : vector<16x8xf32> to vector<16x8xbf16>
    %64 = vector.shape_cast %63 : vector<16x8xbf16> to vector<2x8x8xbf16>
    "tpu.trace_start"() <{level = 10 : i32, message = "bsd,btd->bst"}> : () -> ()
    %cst_17 = arith.constant dense<0.000000e+00> : vector<2x8x8xf32>
    %65 = tpu.matmul %60, %62, %cst_17 {dimension_numbers = #tpu.dot_dimension_numbers<[2], [2], [1], [1], [0, 0, 0, 1, 1, 1], [0], [0]>} : vector<2x8x8xbf16>, vector<2x8x8xbf16>, vector<2x8x8xf32> -> vector<2x8x8xf32>
    "tpu.trace_stop"() : () -> ()
    %cst_18 = arith.constant dense<0xFF800000> : vector<2x8xf32>
    %66 = vector.multi_reduction <maximumf>, %65, %cst_18 [2] : vector<2x8x8xf32> to vector<2x8xf32>
    %67 = vector.shape_cast %66 : vector<2x8xf32> to vector<2x8x1xf32>
    %68 = vector.broadcast %67 : vector<2x8x1xf32> to vector<2x8x8xf32>
    %69 = arith.subf %65, %68 : vector<2x8x8xf32>
    %70 = math.exp %69 : vector<2x8x8xf32>
    %cst_19 = arith.constant dense<0.000000e+00> : vector<2x8xf32>
    %71 = vector.multi_reduction <add>, %70, %cst_19 [2] : vector<2x8x8xf32> to vector<2x8xf32>
    %72 = vector.shape_cast %71 : vector<2x8xf32> to vector<2x8x1xf32>
    %73 = tpu.reciprocal %72 {approx = true} : vector<2x8x1xf32> -> vector<2x8x1xf32>
    %74 = vector.broadcast %73 : vector<2x8x1xf32> to vector<2x8x8xf32>
    %75 = arith.mulf %70, %74 : vector<2x8x8xf32>
    %76 = arith.truncf %75 : vector<2x8x8xf32> to vector<2x8x8xbf16>
    "tpu.trace_start"() <{level = 10 : i32, message = "bst,btd->bsd"}> : () -> ()
    %cst_20 = arith.constant dense<0.000000e+00> : vector<2x8x8xf32>
    %77 = tpu.matmul %76, %64, %cst_20 {dimension_numbers = #tpu.dot_dimension_numbers<[2], [1], [1], [2], [0, 0, 0, 1, 1, 2], [0], [0]>} : vector<2x8x8xbf16>, vector<2x8x8xbf16>, vector<2x8x8xf32> -> vector<2x8x8xf32>
    "tpu.trace_stop"() : () -> ()
    %78 = vector.shape_cast %77 : vector<2x8x8xf32> to vector<2x64xf32>
    %c0_21 = arith.constant 0 : index
    %c128 = arith.constant 128 : index
    %79 = vector.load %arg4[%c0_21, %c128] : memref<2x256xf32, #tpu.memory_space<vmem>>, vector<2x64xf32>
    tpu.vector_store %arg4[%c0_21, %c128], %78 {strides = array<i32>} : memref<2x256xf32, #tpu.memory_space<vmem>>, vector<2x64xf32>,
    %80 = vector.extract_strided_slice %7 {offsets = [0, 24], sizes = [16, 8], strides = [1, 1]} : vector<16x96xf32> to vector<16x8xf32>
    %81 = vector.extract_strided_slice %7 {offsets = [0, 56], sizes = [16, 8], strides = [1, 1]} : vector<16x96xf32> to vector<16x8xf32>
    %82 = vector.extract_strided_slice %7 {offsets = [0, 88], sizes = [16, 8], strides = [1, 1]} : vector<16x96xf32> to vector<16x8xf32>
    %83 = arith.truncf %80 : vector<16x8xf32> to vector<16x8xbf16>
    %84 = vector.shape_cast %83 : vector<16x8xbf16> to vector<2x8x8xbf16>
    %85 = arith.truncf %81 : vector<16x8xf32> to vector<16x8xbf16>
    %86 = vector.shape_cast %85 : vector<16x8xbf16> to vector<2x8x8xbf16>
    %87 = arith.truncf %82 : vector<16x8xf32> to vector<16x8xbf16>
    %88 = vector.shape_cast %87 : vector<16x8xbf16> to vector<2x8x8xbf16>
    "tpu.trace_start"() <{level = 10 : i32, message = "bsd,btd->bst"}> : () -> ()
    %cst_22 = arith.constant dense<0.000000e+00> : vector<2x8x8xf32>
    %89 = tpu.matmul %84, %86, %cst_22 {dimension_numbers = #tpu.dot_dimension_numbers<[2], [2], [1], [1], [0, 0, 0, 1, 1, 1], [0], [0]>} : vector<2x8x8xbf16>, vector<2x8x8xbf16>, vector<2x8x8xf32> -> vector<2x8x8xf32>
    "tpu.trace_stop"() : () -> ()
    %cst_23 = arith.constant dense<0xFF800000> : vector<2x8xf32>
    %90 = vector.multi_reduction <maximumf>, %89, %cst_23 [2] : vector<2x8x8xf32> to vector<2x8xf32>
    %91 = vector.shape_cast %90 : vector<2x8xf32> to vector<2x8x1xf32>
    %92 = vector.broadcast %91 : vector<2x8x1xf32> to vector<2x8x8xf32>
    %93 = arith.subf %89, %92 : vector<2x8x8xf32>
    %94 = math.exp %93 : vector<2x8x8xf32>
    %cst_24 = arith.constant dense<0.000000e+00> : vector<2x8xf32>
    %95 = vector.multi_reduction <add>, %94, %cst_24 [2] : vector<2x8x8xf32> to vector<2x8xf32>
    %96 = vector.shape_cast %95 : vector<2x8xf32> to vector<2x8x1xf32>
    %97 = tpu.reciprocal %96 {approx = true} : vector<2x8x1xf32> -> vector<2x8x1xf32>
    %98 = vector.broadcast %97 : vector<2x8x1xf32> to vector<2x8x8xf32>
    %99 = arith.mulf %94, %98 : vector<2x8x8xf32>
    %100 = arith.truncf %99 : vector<2x8x8xf32> to vector<2x8x8xbf16>
    "tpu.trace_start"() <{level = 10 : i32, message = "bst,btd->bsd"}> : () -> ()
    %cst_25 = arith.constant dense<0.000000e+00> : vector<2x8x8xf32>
    %101 = tpu.matmul %100, %88, %cst_25 {dimension_numbers = #tpu.dot_dimension_numbers<[2], [1], [1], [2], [0, 0, 0, 1, 1, 2], [0], [0]>} : vector<2x8x8xbf16>, vector<2x8x8xbf16>, vector<2x8x8xf32> -> vector<2x8x8xf32>
    "tpu.trace_stop"() : () -> ()
    %102 = vector.shape_cast %101 : vector<2x8x8xf32> to vector<2x64xf32>
    %c0_26 = arith.constant 0 : index
    %c192 = arith.constant 192 : index
    %103 = vector.load %arg4[%c0_26, %c192] : memref<2x256xf32, #tpu.memory_space<vmem>>, vector<2x64xf32>
    tpu.vector_store %arg4[%c0_26, %c192], %102 {strides = array<i32>} : memref<2x256xf32, #tpu.memory_space<vmem>>, vector<2x64xf32>,
    return
  }
  func.func @transform_0(%arg0: i32) -> (i32, i32, i32) {
    %c0_i32 = arith.constant 0 : i32
    %c0_i32_0 = arith.constant 0 : i32
    %c0_i32_1 = arith.constant 0 : i32
    return %arg0, %c0_i32, %c0_i32_0 : i32, i32, i32
  }
  func.func @transform_1(%arg0: i32) -> (i32, i32) {
    %c0_i32 = arith.constant 0 : i32
    %c0_i32_0 = arith.constant 0 : i32
    %c0_i32_1 = arith.constant 0 : i32
    return %c0_i32, %c0_i32_0 : i32, i32
  }
  func.func @transform_2(%arg0: i32) -> (i32, i32) {
    %c0_i32 = arith.constant 0 : i32
    %c0_i32_0 = arith.constant 0 : i32
    %c0_i32_1 = arith.constant 0 : i32
    return %c0_i32, %c0_i32_0 : i32, i32
  }
  func.func @transform_3(%arg0: i32) -> (i32, i32) {
    %c0_i32 = arith.constant 0 : i32
    %c0_i32_0 = arith.constant 0 : i32
    return %arg0, %c0_i32 : i32, i32
  }
}

</mosaic_0001>

<bundles_post_ra>
// kernel: tpu_custom_call.1
= control target key start
LH: loop header
LB: loop body
LE: loop exit
PB: predicated region body
PF: predicated region fallthrough
CT: control target
= control target key end

     0   :  { %8 = vsyncpa [#allocation3], 0  ;;  %s2184_s0 = inlined_call_operand.hbm [shape: f32[2,8,32], index: 0, kind: input, shape index: {}]   ;;  %s2185_s1 = inlined_call_operand.hbm [shape: bf16[32,96], index: 1, kind: input, shape index: {}]   ;;  %s2186_s2 = inlined_call_operand.vmem [shape: f32[1,96], index: 2, kind: input, shape index: {}]   ;;  %s2187_s3 = inlined_call_operand.hbm [shape: f32[2,256], index: 3, kind: output, shape index: {}]  }
   0x1   :  { %9 = vsyncpa [#allocation6], 0 }
   0x2   :  { %10 = vsyncpa [#allocation4], 0  ;;  %s1745_s12 = smov [#allocation2]   ;;  %s1673_s16 = scalar_lea.hbm %s2184_s0, 256 }
   0x3   :  { %s16_s13 = sshll.u32 %s1745_s12, 4  ;;  %p1674_p0 = scmp.ne.s32.totalorder %s2184_s0, %s1673_s16  ;;  %s17_s13 = int_to_ptr.vmem [resolvable:$true] %s16_s13 }
   0x4   :  { %p1677_p1 = scmp.lt.u32.totalorder %s1673_s16, %s2184_s0 }
   0x6   :  { %p1679_p2 = pnand %p1677_p1, %p1674_p0 }
   0x8   :  { %1682 = shalt.err (!%p1679_p2)
}
   0x9   :  { %s1683_s21 = scalar_lea.vmem %s17_s13, 256  ;;  %p1688_p4 = scmp.lt.s32.totalorder %s17_s13, %s17_s13 }
   0xa   :  { %p1684_p3 = scmp.ne.s32.totalorder %s17_s13, %s1683_s21  ;;  %p1689_p5 = scmp.lt.s32.totalorder %s1683_s21, %s1683_s21 }
   0xc   :  { %p1690_p6 = por %p1689_p5, %p1688_p4 }
   0xe   :  { %p1691_p7 = pnand %p1690_p6, %p1684_p3 }
  0x10   :  { %1694 = shalt.err (!%p1691_p7)
}
  0x11   :  { %s1746_s22 = smov 128   ;;  %s1747_s23 = smov 8  }
  0x12   :  { %22 = dma.hbm_to_vmem [thread:$0]  %s2184_s0, 256, %s17_s13, [#allocation3], %s1746_s22, %s1746_s22, %s1747_s23  }
  0x13   :  { %s1748_s26 = smov [#allocation5]   ;;  %s1695_s30 = scalar_lea.hbm %s2185_s1, 256 }
  0x14   :  { %s28_s27 = sshll.u32 %s1748_s26, 4  ;;  %p1696_p8 = scmp.ne.s32.totalorder %s2185_s1, %s1695_s30  ;;  %s29_s27 = int_to_ptr.vmem [resolvable:$true] %s28_s27 }
  0x15   :  { %p1699_p9 = scmp.lt.u32.totalorder %s1695_s30, %s2185_s1 }
  0x17   :  { %p1701_p10 = pnand %p1699_p9, %p1696_p8 }
  0x19   :  { %1704 = shalt.err (!%p1701_p10)
}
  0x1a   :  { %s1705_s8 = scalar_lea.vmem %s29_s27, 256  ;;  %p1710_p12 = scmp.lt.s32.totalorder %s29_s27, %s29_s27 }
  0x1b   :  { %p1706_p11 = scmp.ne.s32.totalorder %s29_s27, %s1705_s8  ;;  %p1711_p13 = scmp.lt.s32.totalorder %s1705_s8, %s1705_s8 }
  0x1d   :  { %p1712_p0 = por %p1711_p13, %p1710_p12 }
  0x1f   :  { %p1713_p1 = pnand %p1712_p0, %p1706_p11 }
  0x21   :  { %1716 = shalt.err (!%p1713_p1)
}
  0x22   :  { %s1749_s0 = smov 64   ;;  %s1750_s9 = smov 4  }
  0x23   :  { %34 = dma.hbm_to_vmem [thread:$0]  %s2185_s1, 256, %s29_s27, [#allocation6], %s1749_s0, %s1749_s0, %s1750_s9  }
  0x24   :  { %1739 = dma.done.wait [#allocation3], 256  }
  0x25   :  { %1740 = vsyncadd [#allocation3], 4294967040 }
  0x26   :  { %1741 = dma.done.wait [#allocation6], 256  }
  0x27   :  { %1742 = vsyncadd [#allocation6], 4294967040  ;;  %v1751_v0 = vmov 0.0   ;;  %vm1752_vm0 = vmmov 0   ;;  %v1639_v1 = vld [vmem:[#allocation5] sm:$0xff]   ;;  %v1640_v2 = vld [vmem:[#allocation5 + $0x8] sm:$0xff]   ;;  %v343_v59 = vlaneseq }
  0x28   :  { %1511 = vmatprep.subr.bf16.mxu0 %v1751_v0  ;;  %1515 = vmatprep.mubr.msk.bf16.mxu0 %vm1752_vm0, %v1751_v0  ;;  %v44_v3 = vld [vmem:[#allocation2] sm:$0xff]  ;;  %v45_v4 = vld [vmem:[#allocation2 + $0x8] sm:$0xff]  ;;  %vm70_vm1 = vcmask 261120   ;;  %s1753_s13 = smov 96   ;;  %vm123_vm2 = vcmask 64512   ;;  %vm247_vm3 = vcmask 1043456  }
  0x29   :  { %1519 = vmatprep.subr.bf16.mxu1 %v1751_v0  ;;  %1521 = vmatprep.mubr.msk.bf16.mxu1 %vm1752_vm0, %v1751_v0  ;;  %v46_v5 = vpack.c.bf16 %v45_v4, %v44_v3  ;;  %v1452_v6 = vld [vmem:[%s2186_s2] ss:$0 sm:$0xff]  ;;  %s1754_s2 = smov 88   ;;  %s1755_s14 = smov 120   ;;  %v1756_v57 = vmov 1983009808  }
  0x2a   :  { %1512 = vmatpush3.bf16.msra.mxu0 %v1639_v1  ;;  %v341_v58 = vunpack.c.l.s4 %v1756_v57  ;;  %v1880_v61 = vshrl.u32 %v343_v59, 7  ;;  %s1757_s15 = smov 56   ;;  %s1758_s16 = smov 80   ;;  %vm434_vm4 = vcmask 130048   ;;  %vm436_vm5 = vcmask 195584  }
  0x2b   :  { %1513 = vmatprep.subr.bf16.mxu0 %v1751_v0  ;;  %s1759_s17 = smov 112   ;;  %s1760_s18 = smov 48   ;;  %vm439_vm6 = vcmask 326656   ;;  %vm441_vm7 = vcmask 392192   ;;  %vm443_vm8 = vcmask 457728   ;;  %vm445_vm9 = vcmask 517120  }
  0x2c   :  { %v342_v60 = vunpack.c.0.s8 %v341_v58  ;;  %s1761_s19 = smov 72   ;;  %s1762_s20 = smov 104   ;;  %vm779_vm10 = vcmask 1041920  }
  0x2d   :  { %s1764_s21 = smov 40   ;;  %s1765_s22 = smov 16  }
  0x2e   :  { %1514 = vmatpush3.bf16.msra.mxu0 %v1640_v2  ;;  %v1883_v63 = vsub.s32 %v342_v60, %v1880_v61  ;;  %s1766_s24 = smov 24   ;;  %s1767_s25 = smov 32  }
  0x2f   :  { %1525 = vmatprep.subr.bf16.mxu0 %v1751_v0 }
  0x31   :  { %1516 = vmatmul.mubr.msk.bf16.vlgmr.msra.gmra.mrb[0].mxu0 %vm70_vm1, %v46_v5 }
  0x32   :  { %1527 = vmatprep.mubr.msk.bf16.mxu0 %vm1752_vm0, %v1751_v0 }
 0x104   :  { %v108_v7 = vpop.f32.mrb[0].mxu0 }
 0x105   :  { %v109_v8 = vadd.f32 %v1452_v6, %v108_v7  ;;  %v1517_v9 = vpop.f32.mrb[1].mxu0 }
 0x106   :  { %v111_v10 = vpop.f32.mrb[2].mxu0 }
 0x107   :  { %v1830_v11 = vpack.c.bf16 %v109_v8, %v109_v8  ;;  %v112_v12 = vadd.f32 %v1452_v6, %v111_v10  ;;  %v1518_v13 = vpop.f32.mrb[3].mxu0 }
 0x109   :  { %121 = vrot.lane.b32.xlu0 %v1830_v11, %s1753_s13  ;;  %v1833_v14 = vpack.c.bf16 %v112_v12, %v112_v12 }
 0x10d   :  { %170 = vrot.lane.b32.xlu0 %v1833_v14, %s1753_s13 }
 0x17b   :  { %v122_v15 = vpop.permute.xlu0 %121 }
 0x17c   :  { %v128_v16 = vsel %vm123_vm2, %v122_v15, 0 }
 0x17d   :  { %1520 = vmatpush3.bf16.xpose.msra.mxu1 %v128_v16 }
 0x17e   :  { %1531 = vmatprep.subr.bf16.mxu1 %v1751_v0 }
 0x17f   :  { %v171_v17 = vpop.permute.xlu0 %170 }
 0x180   :  { %v176_v18 = vsel %vm123_vm2, %v171_v17, 0 }
 0x181   :  { %1526 = vmatpush3.bf16.xpose.msra.mxu0 %v176_v18 }
 0x182   :  { %1537 = vmatprep.subr.bf16.mxu0 %v1751_v0 }
 0x184   :  { %1522 = vmatmul.mubr.msk.bf16.vlgmr.msra.gmra.mrb[0].mxu1 %vm123_vm2, %v1830_v11 }
 0x185   :  { %1533 = vmatprep.mubr.msk.bf16.mxu1 %vm1752_vm0, %v1751_v0 }
 0x188   :  { %1528 = vmatmul.mubr.msk.bf16.vlgmr.msra.gmra.mrb[4].mxu0 %vm123_vm2, %v1833_v14 }
 0x189   :  { %1539 = vmatprep.mubr.msk.bf16.mxu0 %vm1752_vm0, %v1751_v0 }
 0x257   :  { %v164_v19 = vpop.f32.mrb[0].mxu1 }
 0x258   :  { %v1523_v20 = vpop.f32.mrb[1].mxu1  ;;  %v218_v21 = vsel %vm123_vm2, %v164_v19, -inf }
 0x259   :  { %219 = vmax.xlane.f32.xlu1 %v218_v21  ;;  %v167_v22 = vpop.f32.mrb[2].mxu1 }
 0x25a   :  { %v1524_v23 = vpop.f32.mrb[3].mxu1 }
 0x25b   :  { %v212_v24 = vpop.f32.mrb[4].mxu0 }
 0x25c   :  { %v1529_v25 = vpop.f32.mrb[5].mxu0  ;;  %v221_v26 = vsel %vm123_vm2, %v212_v24, -inf }
 0x25d   :  { %222 = vmax.xlane.f32.xlu1 %v221_v26  ;;  %v215_v27 = vpop.f32.mrb[6].mxu0 }
 0x25e   :  { %v1530_v28 = vpop.f32.mrb[7].mxu0 }
 0x26e   :  { %242 = vrot.lane.b32.xlu1 %v1830_v11, %s1749_s0 }
 0x272   :  { %291 = vrot.lane.b32.xlu1 %v1833_v14, %s1749_s0 }
 0x276   :  { %449 = vrot.lane.b32.xlu1 %v1830_v11, %s1754_s2 }
 0x2e6   :  { %v220_v29 = vpop.xlane.xlu1 %219 }
 0x2e7   :  { %v224_v30 = vsub.f32 %v164_v19, %v220_v29 }
 0x2e9   :  { %v226_v31 = vmul.f32 1.442695, %v224_v30 }
 0x2ea   :  { %v223_v32 = vpop.xlane.xlu1 %222 }
 0x2eb   :  { %1641 = vpow2.f32 %v226_v31  ;;  %v225_v33 = vsub.f32 %v212_v24, %v223_v32 }
 0x2ed   :  { %v228_v34 = vmul.f32 1.442695, %v225_v33 }
 0x2ee   :  { %v243_v35 = vpop.permute.xlu1 %242 }
 0x2ef   :  { %1643 = vpow2.f32 %v228_v34  ;;  %v249_v36 = vsel %vm247_vm3, %v243_v35, 0 }
 0x2f0   :  { %1532 = vmatpush3.bf16.msra.mxu1 %v249_v36 }
 0x2f1   :  { %1543 = vmatprep.subr.bf16.mxu1 %v1751_v0 }
 0x2f2   :  { %v292_v37 = vpop.permute.xlu1 %291 }
 0x2f3   :  { %v297_v38 = vsel %vm247_vm3, %v292_v37, 0 }
 0x2f4   :  { %1538 = vmatpush3.bf16.msra.mxu0 %v297_v38 }
 0x2f5   :  { %v1642_v39 = vpop.eup %1641  ;;  %1549 = vmatprep.subr.bf16.mxu0 %v1751_v0 }
 0x2f6   :  { %v230_v40 = vsel %vm123_vm2, %v1642_v39, 0.0  ;;  %v450_v43 = vpop.permute.xlu1 %449 }
 0x2f7   :  { %231 = vadd.xlane.f32.xlu0 %v230_v40  ;;  %v455_v50 = vsel %vm123_vm2, %v450_v43, 0 }
 0x2f9   :  { %v1644_v41 = vpop.eup %1643 }
 0x2fa   :  { %v233_v42 = vsel %vm123_vm2, %v1644_v41, 0.0 }
 0x2fb   :  { %234 = vadd.xlane.f32.xlu1 %v233_v42 }
 0x30c   :  { %499 = vrot.lane.b32.xlu1 %v1833_v14, %s1754_s2 }
 0x30d   :  { %447 = vrot.lane.b32.xlu0 %v1830_v11, %s1755_s14 }
 0x310   :  { %497 = vrot.lane.b32.xlu1 %v1833_v14, %s1755_s14 }
 0x384   :  { %v232_v44 = vpop.xlane.xlu0 %231 }
 0x385   :  { %1645 = vrcp.f32 %v232_v44 }
 0x388   :  { %v235_v45 = vpop.xlane.xlu1 %234  ;;  %v448_v55 = vpop.permute.xlu0 %447 }
 0x389   :  { %1647 = vrcp.f32 %v235_v45 }
 0x38c   :  { %v500_v52 = vpop.permute.xlu1 %499 }
 0x38d   :  { %v505_v54 = vsel %vm123_vm2, %v500_v52, 0 }
 0x38f   :  { %v1646_v46 = vpop.eup %1645 }
 0x390   :  { %v238_v47 = vmul.f32 %v1646_v46, %v1642_v39  ;;  %v498_v56 = vpop.permute.xlu1 %497 }
 0x392   :  { %v240_v48 = vpack.c.bf16 %v238_v47, %v238_v47 }
 0x393   :  { %v1648_v49 = vpop.eup %1647 }
 0x394   :  { %v239_v51 = vmul.f32 %v1648_v49, %v1644_v41  ;;  %1534 = vmatmul.mubr.msk.bf16.vlgmr.msra.gmra.mrb[4].mxu1 %vm123_vm2, %v240_v48 }
 0x395   :  { %1544 = vmatpush3.bf16.xpose.msra.mxu1 %v455_v50  ;;  %1545 = vmatprep.mubr.msk.bf16.mxu1 %vm1752_vm0, %v1751_v0 }
 0x396   :  { %v241_v53 = vpack.c.bf16 %v239_v51, %v239_v51  ;;  %1555 = vmatprep.subr.bf16.mxu1 %v1751_v0 }
 0x398   :  { %1540 = vmatmul.mubr.msk.bf16.vlgmr.msra.gmra.mrb[8].mxu0 %vm123_vm2, %v241_v53 }
 0x399   :  { %1550 = vmatpush3.bf16.xpose.msra.mxu0 %v505_v54  ;;  %1551 = vmatprep.mubr.msk.bf16.mxu0 %vm1752_vm0, %v1751_v0 }
 0x39a   :  { %1561 = vmatprep.subr.bf16.mxu0 %v1751_v0 }
 0x39c   :  { %1546 = vmatmul.mubr.msk.bf16.vlgmr.msra.gmra.mrb[8].mxu1 %vm123_vm2, %v448_v55 }
 0x39d   :  { %1557 = vmatprep.mubr.msk.bf16.mxu1 %vm1752_vm0, %v1751_v0 }
 0x3a0   :  { %1552 = vmatmul.mubr.msk.bf16.vlgmr.msra.gmra.mrb[12].mxu0 %vm123_vm2, %v498_v56 }
 0x3a1   :  { %1563 = vmatprep.mubr.msk.bf16.mxu0 %vm1752_vm0, %v1751_v0 }
 0x467   :  { %v285_v62 = vpop.f32.mrb[4].mxu1 }
 0x468   :  { %v1535_v1 = vpop.f32.mrb[5].mxu1  ;;  %v339_v3 = vcombine.high %v285_v62, %v1751_v0  ;;  %v1887_v6 = vrot.slane %v285_v62, %v1883_v63 }
 0x469   :  { %v288_v2 = vpop.f32.mrb[6].mxu1 }
 0x46a   :  { %v1536_v4 = vpop.f32.mrb[7].mxu1  ;;  %v1894_v12 = vrot.slane %v339_v3, %v1883_v63 }
 0x46b   :  { %v333_v5 = vpop.f32.mrb[8].mxu0 }
 0x46c   :  { %v354_v7 = vcombine.high %v333_v5, %v1751_v0  ;;  %v1891_v8 = vrot.slane %v333_v5, %v1883_v63  ;;  %v1541_v9 = vpop.f32.mrb[9].mxu0 }
 0x46d   :  { %v336_v10 = vpop.f32.mrb[10].mxu0 }
 0x46e   :  { %v1897_v13 = vrot.slane %v354_v7, %v1883_v63  ;;  %v369_v15 = vcombine.low %v1887_v6, %v1891_v8  ;;  %v370_v16 = vcombine.high %v1887_v6, %v1891_v8  ;;  %v1542_v17 = vpop.f32.mrb[11].mxu0 }
 0x46f   :  { %v491_v18 = vpop.f32.mrb[8].mxu1 }
 0x470   :  { %v385_v19 = vcombine.low %v1894_v12, %v1897_v13  ;;  %v386_v20 = vcombine.high %v1894_v12, %v1897_v13  ;;  %v1547_v21 = vpop.f32.mrb[9].mxu1  ;;  %v547_v22 = vsel %vm123_vm2, %v491_v18, -inf }
 0x471   :  { %548 = vmax.xlane.f32.xlu1 %v547_v22  ;;  %v494_v23 = vpop.f32.mrb[10].mxu1 }
 0x472   :  { %v1548_v24 = vpop.f32.mrb[11].mxu1 }
 0x473   :  { %v541_v25 = vpop.f32.mrb[12].mxu0 }
 0x474   :  { %v1553_v26 = vpop.f32.mrb[13].mxu0  ;;  %v550_v27 = vsel %vm123_vm2, %v541_v25, -inf }
 0x475   :  { %551 = vmax.xlane.f32.xlu0 %v550_v27  ;;  %v544_v28 = vpop.f32.mrb[14].mxu0 }
 0x476   :  { %v1554_v29 = vpop.f32.mrb[15].mxu0 }
 0x482   :  { %571 = vrot.lane.b32.xlu1 %v1830_v11, %s1757_s15 }
 0x486   :  { %783 = vrot.lane.b32.xlu1 %v1830_v11, %s1758_s16 }
 0x48b   :  { %619 = vrot.lane.b32.xlu0 %v1833_v14, %s1757_s15 }
 0x48f   :  { %781 = vrot.lane.b32.xlu0 %v1830_v11, %s1759_s17 }
 0x4fe   :  { %v549_v30 = vpop.xlane.xlu1 %548 }
 0x4ff   :  { %v553_v31 = vsub.f32 %v491_v18, %v549_v30 }
 0x501   :  { %v555_v32 = vmul.f32 1.442695, %v553_v31 }
 0x502   :  { %v572_v33 = vpop.permute.xlu1 %571  ;;  %v552_v34 = vpop.xlane.xlu0 %551 }
 0x503   :  { %1649 = vpow2.f32 %v555_v32  ;;  %v577_v35 = vsel %vm247_vm3, %v572_v33, 0  ;;  %v554_v36 = vsub.f32 %v541_v25, %v552_v34 }
 0x504   :  { %1556 = vmatpush3.bf16.msra.mxu1 %v577_v35 }
 0x505   :  { %v557_v37 = vmul.f32 1.442695, %v554_v36  ;;  %1567 = vmatprep.subr.bf16.mxu1 %v1751_v0 }
 0x506   :  { %v620_v38 = vpop.permute.xlu0 %619  ;;  %v784_v44 = vpop.permute.xlu1 %783 }
 0x507   :  { %1651 = vpow2.f32 %v557_v37  ;;  %v625_v39 = vsel %vm247_vm3, %v620_v38, 0  ;;  %v789_v51 = vsel %vm123_vm2, %v784_v44, 0 }
 0x508   :  { %1562 = vmatpush3.bf16.msra.mxu0 %v625_v39 }
 0x509   :  { %1573 = vmatprep.subr.bf16.mxu0 %v1751_v0 }
 0x50a   :  { %v782_v56 = vpop.permute.xlu0 %781 }
 0x50d   :  { %v1650_v40 = vpop.eup %1649 }
 0x50e   :  { %v559_v41 = vsel %vm123_vm2, %v1650_v40, 0.0 }
 0x50f   :  { %560 = vadd.xlane.f32.xlu1 %v559_v41 }
 0x511   :  { %v1652_v42 = vpop.eup %1651 }
 0x512   :  { %v562_v43 = vsel %vm123_vm2, %v1652_v42, 0.0 }
 0x513   :  { %563 = vadd.xlane.f32.xlu1 %v562_v43 }
 0x524   :  { %833 = vrot.lane.b32.xlu1 %v1833_v14, %s1758_s16 }
 0x528   :  { %831 = vrot.lane.b32.xlu1 %v1833_v14, %s1759_s17 }
 0x59c   :  { %v561_v45 = vpop.xlane.xlu1 %560 }
 0x59d   :  { %1653 = vrcp.f32 %v561_v45 }
 0x5a0   :  { %v564_v46 = vpop.xlane.xlu1 %563 }
 0x5a1   :  { %1655 = vrcp.f32 %v564_v46 }
 0x5a4   :  { %v834_v53 = vpop.permute.xlu1 %833 }
 0x5a5   :  { %v839_v55 = vsel %vm123_vm2, %v834_v53, 0 }
 0x5a7   :  { %v1654_v47 = vpop.eup %1653 }
 0x5a8   :  { %v567_v48 = vmul.f32 %v1654_v47, %v1650_v40  ;;  %v832_v57 = vpop.permute.xlu1 %831 }
 0x5aa   :  { %v569_v49 = vpack.c.bf16 %v567_v48, %v567_v48 }
 0x5ab   :  { %v1656_v50 = vpop.eup %1655 }
 0x5ac   :  { %v568_v52 = vmul.f32 %v1656_v50, %v1652_v42  ;;  %1558 = vmatmul.mubr.msk.bf16.vlgmr.msra.gmra.mrb[12].mxu1 %vm123_vm2, %v569_v49 }
 0x5ad   :  { %1568 = vmatpush3.bf16.xpose.msra.mxu1 %v789_v51  ;;  %1569 = vmatprep.mubr.msk.bf16.mxu1 %vm1752_vm0, %v1751_v0 }
 0x5ae   :  { %v570_v54 = vpack.c.bf16 %v568_v52, %v568_v52  ;;  %1579 = vmatprep.subr.bf16.mxu1 %v1751_v0 }
 0x5b0   :  { %1564 = vmatmul.mubr.msk.bf16.vlgmr.msra.gmra.mrb[16].mxu0 %vm123_vm2, %v570_v54 }
 0x5b1   :  { %1574 = vmatpush3.bf16.xpose.msra.mxu0 %v839_v55  ;;  %1575 = vmatprep.mubr.msk.bf16.mxu0 %vm1752_vm0, %v1751_v0 }
 0x5b2   :  { %1585 = vmatprep.subr.bf16.mxu0 %v1751_v0 }
 0x5b4   :  { %1570 = vmatmul.mubr.msk.bf16.vlgmr.msra.gmra.mrb[16].mxu1 %vm123_vm2, %v782_v56 }
 0x5b5   :  { %1581 = vmatprep.mubr.msk.bf16.mxu1 %vm1752_vm0, %v1751_v0 }
 0x5b8   :  { %1576 = vmatmul.mubr.msk.bf16.vlgmr.msra.gmra.mrb[20].mxu0 %vm123_vm2, %v832_v57 }
 0x5b9   :  { %1587 = vmatprep.mubr.msk.bf16.mxu0 %vm1752_vm0, %v1751_v0 }
 0x67f   :  { %v613_v58 = vpop.f32.mrb[12].mxu1 }
 0x680   :  { %v1559_v59 = vpop.f32.mrb[13].mxu1  ;;  %v667_v62 = vcombine.high %v613_v58, %v1751_v0  ;;  %v1941_v3 = vrot.slane %v613_v58, %v1883_v63 }
 0x681   :  { %v616_v60 = vpop.f32.mrb[14].mxu1 }
 0x682   :  { %v1560_v1 = vpop.f32.mrb[15].mxu1  ;;  %v1948_v10 = vrot.slane %v667_v62, %v1883_v63 }
 0x683   :  { %v661_v2 = vpop.f32.mrb[16].mxu0 }
 0x684   :  { %v682_v4 = vcombine.high %v661_v2, %v1751_v0  ;;  %v1945_v5 = vrot.slane %v661_v2, %v1883_v63  ;;  %v1565_v7 = vpop.f32.mrb[17].mxu0 }
 0x685   :  { %v664_v9 = vpop.f32.mrb[18].mxu0 }
 0x686   :  { %v1951_v17 = vrot.slane %v682_v4, %v1883_v63  ;;  %v697_v18 = vcombine.low %v1941_v3, %v1945_v5  ;;  %v698_v21 = vcombine.high %v1941_v3, %v1945_v5  ;;  %v1566_v22 = vpop.f32.mrb[19].mxu0 }
 0x687   :  { %v825_v23 = vpop.f32.mrb[16].mxu1 }
 0x688   :  { %v713_v24 = vcombine.low %v1948_v10, %v1951_v17  ;;  %v714_v25 = vcombine.high %v1948_v10, %v1951_v17  ;;  %v1571_v26 = vpop.f32.mrb[17].mxu1  ;;  %v881_v27 = vsel %vm123_vm2, %v825_v23, -inf }
 0x689   :  { %882 = vmax.xlane.f32.xlu0 %v881_v27  ;;  %v828_v28 = vpop.f32.mrb[18].mxu1 }
 0x68a   :  { %v1572_v29 = vpop.f32.mrb[19].mxu1 }
 0x68b   :  { %v875_v30 = vpop.f32.mrb[20].mxu0 }
 0x68c   :  { %v1577_v31 = vpop.f32.mrb[21].mxu0  ;;  %v884_v32 = vsel %vm123_vm2, %v875_v30, -inf }
 0x68d   :  { %885 = vmax.xlane.f32.xlu1 %v884_v32  ;;  %v878_v33 = vpop.f32.mrb[22].mxu0 }
 0x68e   :  { %v1578_v34 = vpop.f32.mrb[23].mxu0 }
 0x69e   :  { %905 = vrot.lane.b32.xlu1 %v1830_v11, %s1760_s18 }
 0x6a2   :  { %1105 = vrot.lane.b32.xlu1 %v1830_v11, %s1761_s19 }
 0x6a6   :  { %1155 = vrot.lane.b32.xlu1 %v1833_v14, %s1761_s19 }
 0x6aa   :  { %1153 = vrot.lane.b32.xlu1 %v1833_v14, %s1762_s20 }
 0x716   :  { %v883_v35 = vpop.xlane.xlu0 %882 }
 0x717   :  { %v887_v36 = vsub.f32 %v825_v23, %v883_v35 }
 0x719   :  { %v889_v37 = vmul.f32 1.442695, %v887_v36 }
 0x71a   :  { %v886_v38 = vpop.xlane.xlu1 %885 }
 0x71b   :  { %1657 = vpow2.f32 %v889_v37  ;;  %v888_v39 = vsub.f32 %v875_v30, %v886_v38 }
 0x71d   :  { %v891_v40 = vmul.f32 1.442695, %v888_v39 }
 0x71e   :  { %v906_v41 = vpop.permute.xlu1 %905 }
 0x71f   :  { %1659 = vpow2.f32 %v891_v40  ;;  %v911_v42 = vsel %vm247_vm3, %v906_v41, 0 }
 0x720   :  { %1580 = vmatpush3.bf16.msra.mxu1 %v911_v42 }
 0x721   :  { %1591 = vmatprep.subr.bf16.mxu1 %v1751_v0 }
 0x722   :  { %v1106_v52 = vpop.permute.xlu1 %1105 }
 0x723   :  { %v1111_v56 = vsel %vm123_vm2, %v1106_v52, 0 }
 0x725   :  { %v1658_v43 = vpop.eup %1657 }
 0x726   :  { %v893_v44 = vsel %vm123_vm2, %v1658_v43, 0.0  ;;  %v1156_v58 = vpop.permute.xlu1 %1155 }
 0x727   :  { %894 = vadd.xlane.f32.xlu0 %v893_v44  ;;  %v1161_v60 = vsel %vm123_vm2, %v1156_v58, 0 }
 0x729   :  { %v1660_v45 = vpop.eup %1659 }
 0x72a   :  { %v896_v46 = vsel %vm123_vm2, %v1660_v45, 0.0  ;;  %v1154_v1 = vpop.permute.xlu1 %1153 }
 0x72b   :  { %897 = vadd.xlane.f32.xlu0 %v896_v46 }
 0x741   :  { %953 = vrot.lane.b32.xlu0 %v1833_v14, %s1760_s18 }
 0x745   :  { %1103 = vrot.lane.b32.xlu0 %v1830_v11, %s1762_s20 }
 0x7b4   :  { %v895_v47 = vpop.xlane.xlu0 %894 }
 0x7b5   :  { %1661 = vrcp.f32 %v895_v47 }
 0x7b8   :  { %v898_v48 = vpop.xlane.xlu0 %897 }
 0x7b9   :  { %1663 = vrcp.f32 %v898_v48  ;;  %v1763_v48 = vmov 1934713408  }
 0x7bc   :  { %v954_v49 = vpop.permute.xlu0 %953 }
 0x7bd   :  { %v959_v50 = vsel %vm247_vm3, %v954_v49, 0  ;;  %v372_v49 = vunpack.c.l.s4 %v1763_v48 }
 0x7be   :  { %1586 = vmatpush3.bf16.msra.mxu0 %v959_v50 }
 0x7bf   :  { %v1662_v51 = vpop.eup %1661  ;;  %1597 = vmatprep.subr.bf16.mxu0 %v1751_v0  ;;  %v373_v50 = vunpack.c.0.s8 %v372_v49 }
 0x7c0   :  { %v901_v53 = vmul.f32 %v1662_v51, %v1658_v43  ;;  %v1104_v62 = vpop.permute.xlu0 %1103 }
 0x7c1   :  { %v2018_v51 = vsub.s32 %v373_v50, %v1880_v61 }
 0x7c2   :  { %v903_v54 = vpack.c.bf16 %v901_v53, %v901_v53 }
 0x7c3   :  { %v1664_v55 = vpop.eup %1663  ;;  %v2024_v52 = vrot.slane %v697_v18, %v2018_v51  ;;  %v728_v3 = vrot.slane %v714_v25, %v2018_v51  ;;  %v384_v10 = vrot.slane %v370_v16, %v2018_v51  ;;  %v400_v6 = vrot.slane %v386_v20, %v2018_v51 }
 0x7c4   :  { %v902_v57 = vmul.f32 %v1664_v55, %v1660_v45  ;;  %1582 = vmatmul.mubr.msk.bf16.vlgmr.msra.gmra.mrb[20].mxu1 %vm123_vm2, %v903_v54 }
 0x7c5   :  { %1592 = vmatpush3.bf16.xpose.msra.mxu1 %v1111_v56  ;;  %1593 = vmatprep.mubr.msk.bf16.mxu1 %vm1752_vm0, %v1751_v0  ;;  %v729_v53 = vcombine.high %v2024_v52, %v1751_v0  ;;  %v732_v5 = vcombine.high %v728_v3, %v1751_v0  ;;  %v402_v17 = vcombine.high %v384_v10, %v1751_v0 }
 0x7c6   :  { %v904_v59 = vpack.c.bf16 %v902_v57, %v902_v57  ;;  %1603 = vmatprep.subr.bf16.mxu1 %v1751_v0  ;;  %v404_v8 = vcombine.high %v400_v6, %v1751_v0 }
 0x7c8   :  { %1588 = vmatmul.mubr.msk.bf16.vlgmr.msra.gmra.mrb[24].mxu0 %vm123_vm2, %v904_v59 }
 0x7c9   :  { %1598 = vmatpush3.bf16.xpose.msra.mxu0 %v1161_v60  ;;  %1599 = vmatprep.mubr.msk.bf16.mxu0 %vm1752_vm0, %v1751_v0 }
 0x7ca   :  { %1609 = vmatprep.subr.bf16.mxu0 %v1751_v0 }
 0x7cc   :  { %1594 = vmatmul.mubr.msk.bf16.vlgmr.msra.gmra.mrb[24].mxu1 %vm123_vm2, %v1104_v62 }
 0x7cd   :  { %1605 = vmatprep.mubr.msk.bf16.mxu1 %vm1752_vm0, %v1751_v0 }
 0x7d0   :  { %1600 = vmatmul.mubr.msk.bf16.vlgmr.msra.gmra.mrb[28].mxu0 %vm123_vm2, %v1154_v1 }
 0x7d1   :  { %1611 = vmatprep.mubr.msk.bf16.mxu0 %vm1752_vm0, %v1751_v0 }
 0x897   :  { %v947_v2 = vpop.f32.mrb[20].mxu1 }
 0x898   :  { %v1583_v4 = vpop.f32.mrb[21].mxu1  ;;  %v1001_v9 = vcombine.high %v947_v2, %v1751_v0  ;;  %v1995_v26 = vrot.slane %v947_v2, %v1883_v63  ;;  %v712_v2 = vrot.slane %v698_v21, %v2018_v51  ;;  %v377_v21 = vrot.slane %v369_v15, %v2018_v51 }
 0x899   :  { %v950_v7 = vpop.f32.mrb[22].mxu1  ;;  %v393_v15 = vrot.slane %v385_v19, %v2018_v51 }
 0x89a   :  { %v1584_v22 = vpop.f32.mrb[23].mxu1  ;;  %v2002_v31 = vrot.slane %v1001_v9, %v1883_v63  ;;  %v730_v4 = vcombine.high %v712_v2, %v1751_v0  ;;  %v721_v7 = vrot.slane %v713_v24, %v2018_v51  ;;  %v401_v24 = vcombine.high %v377_v21, %v1751_v0 }
 0x89b   :  { %v995_v23 = vpop.f32.mrb[24].mxu0  ;;  %v403_v25 = vcombine.high %v393_v15, %v1751_v0 }
 0x89c   :  { %v1016_v27 = vcombine.high %v995_v23, %v1751_v0  ;;  %v1999_v28 = vrot.slane %v995_v23, %v1883_v63  ;;  %v1589_v29 = vpop.f32.mrb[25].mxu0 }
 0x89d   :  { %v998_v30 = vpop.f32.mrb[26].mxu0 }
 0x89e   :  { %v2005_v32 = vrot.slane %v1016_v27, %v1883_v63  ;;  %v1031_v33 = vcombine.low %v1995_v26, %v1999_v28  ;;  %v1032_v34 = vcombine.high %v1995_v26, %v1999_v28  ;;  %v1590_v35 = vpop.f32.mrb[27].mxu0 }
 0x89f   :  { %v1147_v36 = vpop.f32.mrb[24].mxu1 }
 0x8a0   :  { %v1047_v37 = vcombine.low %v2002_v31, %v2005_v32  ;;  %v1048_v38 = vcombine.high %v2002_v31, %v2005_v32  ;;  %v1595_v39 = vpop.f32.mrb[25].mxu1  ;;  %v1203_v40 = vsel %vm123_vm2, %v1147_v36, -inf }
 0x8a1   :  { %1204 = vmax.xlane.f32.xlu0 %v1203_v40  ;;  %v1150_v41 = vpop.f32.mrb[26].mxu1 }
 0x8a2   :  { %v1596_v42 = vpop.f32.mrb[27].mxu1  ;;  %v1062_v26 = vrot.slane %v1048_v38, %v2018_v51 }
 0x8a3   :  { %v1197_v43 = vpop.f32.mrb[28].mxu0 }
 0x8a4   :  { %v1601_v44 = vpop.f32.mrb[29].mxu0  ;;  %v1206_v45 = vsel %vm123_vm2, %v1197_v43, -inf  ;;  %v1066_v28 = vcombine.high %v1062_v26, %v1751_v0 }
 0x8a5   :  { %1207 = vmax.xlane.f32.xlu1 %v1206_v45  ;;  %v1200_v46 = vpop.f32.mrb[30].mxu0 }
 0x8a6   :  { %v1602_v47 = vpop.f32.mrb[31].mxu0 }
 0x8b6   :  { %1227 = vrot.lane.b32.xlu1 %v1830_v11, %s1764_s21 }
 0x8ba   :  { %734 = vrot.lane.b32.xlu1 %v729_v53, %s1747_s23 }
 0x92e   :  { %v1205_v54 = vpop.xlane.xlu0 %1204 }
 0x92f   :  { %v1209_v55 = vsub.f32 %v1147_v36, %v1205_v54 }
 0x931   :  { %v1211_v56 = vmul.f32 1.442695, %v1209_v55 }
 0x932   :  { %v1208_v61 = vpop.xlane.xlu1 %1207 }
 0x933   :  { %1665 = vpow2.f32 %v1211_v56  ;;  %v1210_v57 = vsub.f32 %v1197_v43, %v1208_v61 }
 0x935   :  { %v1213_v58 = vmul.f32 1.442695, %v1210_v57 }
 0x936   :  { %v1228_v59 = vpop.permute.xlu1 %1227 }
 0x937   :  { %1667 = vpow2.f32 %v1213_v58  ;;  %v1233_v18 = vsel %vm247_vm3, %v1228_v59, 0 }
 0x938   :  { %1604 = vmatpush3.bf16.msra.mxu1 %v1233_v18 }
 0x93a   :  { %v735_v39 = vpop.permute.xlu1 %734 }
 0x93b   :  { %v761_v41 = vsel %vm123_vm2, %v2024_v52, %v735_v39  ;;  %v1039_v39 = vrot.slane %v1031_v33, %v2018_v51  ;;  %v1055_v33 = vrot.slane %v1047_v37, %v2018_v51 }
 0x93d   :  { %v1666_v60 = vpop.eup %1665 }
 0x93e   :  { %v1215_v11 = vsel %vm123_vm2, %v1666_v60, 0.0 }
 0x93f   :  { %1216 = vadd.xlane.f32.xlu0 %v1215_v11 }
 0x941   :  { %v1668_v62 = vpop.eup %1667 }
 0x942   :  { %v1218_v1 = vsel %vm123_vm2, %v1668_v62, 0.0 }
 0x943   :  { %1219 = vadd.xlane.f32.xlu0 %v1218_v1 }
 0x959   :  { %1275 = vrot.lane.b32.xlu0 %v1833_v14, %s1764_s21  ;;  %v731_v14 = vcombine.high %v721_v7, %v1751_v0 }
 0x95d   :  { %738 = vrot.lane.b32.xlu0 %v712_v2, %s1765_s22 }
 0x961   :  { %742 = vrot.lane.b32.xlu0 %v730_v4, %s1766_s24 }
 0x965   :  { %746 = vrot.lane.b32.xlu0 %v721_v7, %s1767_s25 }
 0x969   :  { %750 = vrot.lane.b32.xlu0 %v731_v14, %s1764_s21 }
 0x96d   :  { %754 = vrot.lane.b32.xlu0 %v728_v3, %s1760_s18 }
 0x971   :  { %758 = vrot.lane.b32.xlu0 %v732_v5, %s1757_s15 }
 0x975   :  { %406 = vrot.lane.b32.xlu0 %v401_v24, %s1747_s23 }
 0x979   :  { %410 = vrot.lane.b32.xlu0 %v384_v10, %s1765_s22 }
 0x97d   :  { %414 = vrot.lane.b32.xlu0 %v402_v17, %s1766_s24 }
 0x981   :  { %418 = vrot.lane.b32.xlu0 %v393_v15, %s1767_s25 }
 0x985   :  { %422 = vrot.lane.b32.xlu0 %v403_v25, %s1764_s21 }
 0x989   :  { %426 = vrot.lane.b32.xlu0 %v400_v6, %s1760_s18 }
 0x98d   :  { %430 = vrot.lane.b32.xlu0 %v404_v8, %s1757_s15 }
 0x9cc   :  { %v1217_v16 = vpop.xlane.xlu0 %1216 }
 0x9cd   :  { %1669 = vrcp.f32 %v1217_v16 }
 0x9d0   :  { %v1220_v19 = vpop.xlane.xlu0 %1219 }
 0x9d1   :  { %1671 = vrcp.f32 %v1220_v19 }
 0x9d4   :  { %v1276_v9 = vpop.permute.xlu0 %1275 }
 0x9d5   :  { %v1281_v22 = vsel %vm247_vm3, %v1276_v9, 0 }
 0x9d6   :  { %1610 = vmatpush3.bf16.msra.mxu0 %v1281_v22 }
 0x9d7   :  { %v1670_v23 = vpop.eup %1669 }
 0x9d8   :  { %v1223_v27 = vmul.f32 %v1670_v23, %v1666_v60  ;;  %v739_v29 = vpop.permute.xlu0 %738 }
 0x9d9   :  { %v762_v42 = vsel %vm434_vm4, %v761_v41, %v739_v29  ;;  %v1046_v41 = vrot.slane %v1032_v34, %v2018_v51 }
 0x9da   :  { %v1225_v30 = vpack.c.bf16 %v1223_v27, %v1223_v27 }
 0x9db   :  { %v1672_v12 = vpop.eup %1671 }
 0x9dc   :  { %v1224_v13 = vmul.f32 %v1672_v12, %v1668_v62  ;;  %v743_v20 = vpop.permute.xlu0 %742  ;;  %1606 = vmatmul.mubr.msk.bf16.vlgmr.msra.gmra.mrb[28].mxu1 %vm123_vm2, %v1225_v30 }
 0x9dd   :  { %v763_v44 = vsel %vm436_vm5, %v762_v42, %v743_v20  ;;  %v1064_v42 = vcombine.high %v1046_v41, %v1751_v0 }
 0x9de   :  { %v1226_v35 = vpack.c.bf16 %v1224_v13, %v1224_v13 }
 0x9e0   :  { %1612 = vmatmul.mubr.msk.bf16.vlgmr.msra.gmra.mrb[32].mxu0 %vm123_vm2, %v1226_v35  ;;  %v747_v36 = vpop.permute.xlu0 %746 }
 0x9e1   :  { %v764_v45 = vsel %vm70_vm1, %v763_v44, %v747_v36 }
 0x9e4   :  { %v751_v40 = vpop.permute.xlu0 %750 }
 0x9e5   :  { %v765_v46 = vsel %vm439_vm6, %v764_v45, %v751_v40  ;;  %v1063_v40 = vcombine.high %v1039_v39, %v1751_v0 }
 0x9e8   :  { %v755_v43 = vpop.permute.xlu0 %754 }
 0x9e9   :  { %v766_v47 = vsel %vm441_vm7, %v765_v46, %v755_v43  ;;  %v1065_v43 = vcombine.high %v1055_v33, %v1751_v0 }
 0x9ec   :  { %v759_v48 = vpop.permute.xlu0 %758 }
 0x9ed   :  { %v767_v49 = vsel %vm443_vm8, %v766_v47, %v759_v48 }
 0x9ee   :  { %v775_v50 = vrot.slane %v767_v49, %v1883_v63 }
 0x9f0   :  { %v407_v52 = vpop.permute.xlu0 %406  ;;  %776 = vrot.lane.b32.xlu0 %v775_v50, %s1749_s0 }
 0x9f1   :  { %v433_v61 = vsel %vm123_vm2, %v377_v21, %v407_v52 }
 0x9f4   :  { %v411_v53 = vpop.permute.xlu0 %410 }
 0x9f5   :  { %v435_v57 = vsel %vm434_vm4, %v433_v61, %v411_v53 }
 0x9f8   :  { %v415_v54 = vpop.permute.xlu0 %414 }
 0x9f9   :  { %v437_v59 = vsel %vm436_vm5, %v435_v57, %v415_v54 }
 0x9fc   :  { %v419_v55 = vpop.permute.xlu0 %418 }
 0x9fd   :  { %v438_v18 = vsel %vm70_vm1, %v437_v59, %v419_v55 }
 0xa00   :  { %v423_v56 = vpop.permute.xlu0 %422 }
 0xa01   :  { %v440_v60 = vsel %vm439_vm6, %v438_v18, %v423_v56 }
 0xa04   :  { %v427_v58 = vpop.permute.xlu0 %426 }
 0xa05   :  { %v442_v11 = vsel %vm441_vm7, %v440_v60, %v427_v58 }
 0xa08   :  { %v431_v62 = vpop.permute.xlu0 %430 }
 0xa09   :  { %v444_v1 = vsel %vm443_vm8, %v442_v11, %v431_v62 }
 0xa0a   :  { %446 = vst.msk [vmem:[#allocation7] sm:$0x3] %vm445_vm9, %v444_v1 }
 0xa62   :  { %v777_v2 = vpop.permute.xlu0 %776 }
 0xa63   :  { %780 = vst.msk [vmem:[#allocation7] sm:$0x3] %vm779_vm10, %v777_v2 }
 0xaaf   :  { %v1269_v4 = vpop.f32.mrb[28].mxu1 }
 0xab0   :  { %v1607_v7 = vpop.f32.mrb[29].mxu1  ;;  %v1323_v3 = vcombine.high %v1269_v4, %v1751_v0  ;;  %v1330_v24 = vrot.slane %v1269_v4, %v1883_v63 }
 0xab1   :  { %v1272_v14 = vpop.f32.mrb[30].mxu1 }
 0xab2   :  { %v1608_v5 = vpop.f32.mrb[31].mxu1  ;;  %v1337_v6 = vrot.slane %v1323_v3, %v1883_v63 }
 0xab3   :  { %v1317_v21 = vpop.f32.mrb[32].mxu0 }
 0xab4   :  { %v1338_v10 = vcombine.high %v1317_v21, %v1751_v0  ;;  %v1345_v17 = vrot.slane %v1317_v21, %v1883_v63  ;;  %v1613_v15 = vpop.f32.mrb[33].mxu0 }
 0xab5   :  { %v1320_v25 = vpop.f32.mrb[34].mxu0 }
 0xab6   :  { %v1352_v8 = vrot.slane %v1338_v10, %v1883_v63  ;;  %v1353_v16 = vcombine.low %v1330_v24, %v1345_v17  ;;  %v1354_v19 = vcombine.high %v1330_v24, %v1345_v17  ;;  %v1614_v9 = vpop.f32.mrb[35].mxu0 }
 0xab8   :  { %v1369_v22 = vcombine.low %v1337_v6, %v1352_v8  ;;  %v1370_v23 = vcombine.high %v1337_v6, %v1352_v8  ;;  %v1368_v27 = vrot.slane %v1354_v19, %v2018_v51  ;;  %v1361_v29 = vrot.slane %v1353_v16, %v2018_v51 }
 0xaba   :  { %1394 = vrot.lane.b32.xlu1 %v1368_v27, %s1765_s22  ;;  %v1385_v30 = vcombine.high %v1361_v29, %v1751_v0  ;;  %v1386_v12 = vcombine.high %v1368_v27, %v1751_v0  ;;  %v1377_v13 = vrot.slane %v1369_v22, %v2018_v51  ;;  %v1384_v20 = vrot.slane %v1370_v23, %v2018_v51 }
 0xabc   :  { %v1387_v35 = vcombine.high %v1377_v13, %v1751_v0  ;;  %v1388_v36 = vcombine.high %v1384_v20, %v1751_v0 }
 0xabe   :  { %1390 = vrot.lane.b32.xlu1 %v1385_v30, %s1747_s23 }
 0xac2   :  { %1398 = vrot.lane.b32.xlu1 %v1386_v12, %s1766_s24 }
 0xac6   :  { %1402 = vrot.lane.b32.xlu1 %v1377_v13, %s1767_s25 }
 0xaca   :  { %1410 = vrot.lane.b32.xlu1 %v1384_v20, %s1760_s18 }
 0xace   :  { %1406 = vrot.lane.b32.xlu1 %v1387_v35, %s1764_s21 }
 0xad2   :  { %1414 = vrot.lane.b32.xlu1 %v1388_v36, %s1757_s15 }
 0xad6   :  { %1068 = vrot.lane.b32.xlu1 %v1063_v40, %s1747_s23  ;;  %s1768_s23 = smov [#allocation7]  }
 0xad7   :  { %s1442_s26 = sshll.u32 %s1768_s23, 4  ;;  %s1443_s26 = int_to_ptr.vmem [resolvable:$true] %s1442_s26 }
 0xad8   :  { %s1717_s27 = scalar_lea.vmem %s1443_s26, 64  ;;  %p1722_p3 = scmp.lt.s32.totalorder %s1443_s26, %s1443_s26 }
 0xad9   :  { %p1718_p2 = scmp.ne.s32.totalorder %s1443_s26, %s1717_s27  ;;  %p1723_p4 = scmp.lt.s32.totalorder %s1717_s27, %s1717_s27 }
 0xada   :  { %1072 = vrot.lane.b32.xlu1 %v1046_v41, %s1765_s22 }
 0xadb   :  { %p1724_p5 = por %p1723_p4, %p1722_p3 }
 0xadd   :  { %p1725_p6 = pnand %p1724_p5, %p1718_p2 }
 0xade   :  { %1076 = vrot.lane.b32.xlu1 %v1064_v42, %s1766_s24 }
 0xae2   :  { %1080 = vrot.lane.b32.xlu1 %v1055_v33, %s1767_s25 }
 0xae6   :  { %1084 = vrot.lane.b32.xlu1 %v1065_v43, %s1764_s21 }
 0xaea   :  { %1088 = vrot.lane.b32.xlu1 %v1062_v26, %s1760_s18 }
 0xaee   :  { %1092 = vrot.lane.b32.xlu1 %v1066_v28, %s1757_s15 }
 0xb2c   :  { %v1395_v34 = vpop.permute.xlu1 %1394 }
 0xb30   :  { %v1391_v44 = vpop.permute.xlu1 %1390 }
 0xb31   :  { %v1417_v46 = vsel %vm123_vm2, %v1361_v29, %v1391_v44 }
 0xb32   :  { %v1418_v48 = vsel %vm434_vm4, %v1417_v46, %v1395_v34 }
 0xb34   :  { %v1399_v37 = vpop.permute.xlu1 %1398 }
 0xb35   :  { %v1419_v49 = vsel %vm436_vm5, %v1418_v48, %v1399_v37 }
 0xb38   :  { %v1403_v45 = vpop.permute.xlu1 %1402 }
 0xb39   :  { %v1420_v31 = vsel %vm70_vm1, %v1419_v49, %v1403_v45 }
 0xb3c   :  { %v1411_v47 = vpop.permute.xlu1 %1410 }
 0xb40   :  { %v1407_v32 = vpop.permute.xlu1 %1406 }
 0xb41   :  { %v1421_v38 = vsel %vm439_vm6, %v1420_v31, %v1407_v32 }
 0xb42   :  { %v1422_v0 = vsel %vm441_vm7, %v1421_v38, %v1411_v47 }
 0xb44   :  { %v1415_v51 = vpop.permute.xlu1 %1414 }
 0xb45   :  { %v1423_v50 = vsel %vm443_vm8, %v1422_v0, %v1415_v51 }
 0xb46   :  { %v1431_v52 = vrot.slane %v1423_v50, %v1883_v63 }
 0xb48   :  { %1432 = vrot.lane.b32.xlu1 %v1431_v52, %s1749_s0  ;;  %v1069_v53 = vpop.permute.xlu1 %1068 }
 0xb49   :  { %v1095_v57 = vsel %vm123_vm2, %v1039_v39, %v1069_v53 }
 0xb4c   :  { %v1073_v54 = vpop.permute.xlu1 %1072 }
 0xb4d   :  { %v1096_v58 = vsel %vm434_vm4, %v1095_v57, %v1073_v54 }
 0xb50   :  { %v1077_v55 = vpop.permute.xlu1 %1076 }
 0xb51   :  { %v1097_v18 = vsel %vm436_vm5, %v1096_v58, %v1077_v55 }
 0xb54   :  { %v1081_v56 = vpop.permute.xlu1 %1080 }
 0xb55   :  { %v1098_v60 = vsel %vm70_vm1, %v1097_v18, %v1081_v56 }
 0xb58   :  { %v1085_v61 = vpop.permute.xlu1 %1084 }
 0xb59   :  { %v1099_v11 = vsel %vm439_vm6, %v1098_v60, %v1085_v61 }
 0xb5c   :  { %v1089_v59 = vpop.permute.xlu1 %1088 }
 0xb5d   :  { %v1100_v63 = vsel %vm441_vm7, %v1099_v11, %v1089_v59 }
 0xb60   :  { %v1093_v62 = vpop.permute.xlu1 %1092 }
 0xb61   :  { %v1101_v1 = vsel %vm443_vm8, %v1100_v63, %v1093_v62 }
 0xb62   :  { %1102 = vst.msk [vmem:[#allocation7 + $0x2] sm:$0x3] %vm445_vm9, %v1101_v1 }
 0xbba   :  { %v1433_v2 = vpop.permute.xlu1 %1432 }
 0xbbb   :  { %1435 = vst.msk [vmem:[#allocation7 + $0x2] sm:$0x3] %vm779_vm10, %v1433_v2 }
 0xbbc   :  { %1728 = shalt.err (!%p1725_p6)
}
 0xbbd   :  { %s1729_s30 = scalar_lea.hbm %s2187_s3, 64 }
 0xbbe   :  { %p1730_p7 = scmp.ne.s32.totalorder %s2187_s3, %s1729_s30  ;;  %p1733_p8 = scmp.lt.u32.totalorder %s1729_s30, %s2187_s3 }
 0xbc0   :  { %p1735_p9 = pnand %p1733_p8, %p1730_p7 }
 0xbc2   :  { %1738 = shalt.err (!%p1735_p9)
}
 0xbc3   :  { %1445 = dma.vmem_to_hbm [thread:$0]  %s1443_s26, 64, %s2187_s3, [#allocation4]  }
 0xbc4   :  { %1743 = dma.done.wait [#allocation4], 64  }
 0xbc5   :  { %1744 = vsyncadd [#allocation4], 4294967232 }
 0xbc6   :  { %1449 = vsyncpa [#allocation3], 1 }
 0xbc7   :  { %1450 = vsyncpa [#allocation6], 1 }
 0xbc8   :  { %1451 = vsyncpa [#allocation4], 1 }

</bundles_post_ra>
